<compile_context>
chip_gen: v6e
topology: v6e:2x2x1
jax: 0.10.0
libtpu: 0.0.40
codegen_flags: <defaults>
</compile_context>

<pallas_src>
import jax
import jax.numpy as jnp
from jax import lax
from jax.experimental import pallas as pl
from jax.experimental.pallas import tpu as pltpu

OBS_DIM = 16        # obs_space.shape[0]
HIDDEN = 32         # args.hidden_size (MLPBase output size)
RNN_HIDDEN = 32     # args.recurrent_hidden_size
BATCH = 8
SEQ_LEN = 8         # timesteps processed per pallas_call (T=1 == single-step forward)
LN_EPS = 1e-5

_SLAB_W = 6 * RNN_HIDDEN     # 192 lanes: widest packed row is [b_ih | b_hh]
_SLAB_ROWS = 10


def _layernorm(x, g, b):
    mu = jnp.mean(x, axis=-1, keepdims=True)
    var = jnp.mean(jnp.square(x - mu), axis=-1, keepdims=True)
    return (x - mu) * lax.rsqrt(var + LN_EPS) * g + b


def dsac_critic_kernel(obs_ref, mask_ref, h0_ref, w1_ref, wgru_ref, pvec_ref,
                       val_ref, hout_ref, h_scr):
    H = RNN_HIDDEN
    t = pl.program_id(0)

    # Carry the recurrent state in VMEM scratch across grid steps.
    @pl.when(t == 0)
    def _init():
        h_scr[...] = h0_ref[...]

    # ---- unpack the small-parameter slab (single resident VMEM buffer) ----
    ln0_g = pvec_ref[0:1, 0:OBS_DIM]
    ln0_b = pvec_ref[1:2, 0:OBS_DIM]
    b1    = pvec_ref[2:3, 0:HIDDEN]
    ln1_g = pvec_ref[3:4, 0:HIDDEN]
    ln1_b = pvec_ref[4:5, 0:HIDDEN]
    ln2_g = pvec_ref[5:6, 0:H]
    ln2_b = pvec_ref[6:7, 0:H]
    w_out = pvec_ref[7:8, 0:H]          # value head as a row vector
    b_gru = pvec_ref[8:9, :]            # [1, 6H] = [b_ih | b_hh]
    b_out = pvec_ref[9:10, 0:1]         # [1, 1]

    # ---- MLPBase: feature LayerNorm -> Linear -> ReLU -> LayerNorm ----
    x = obs_ref[0]                                  # [B, OBS_DIM]
    x = _layernorm(x, ln0_g, ln0_b)
    h1 = jnp.dot(x, w1_ref[...], preferred_element_type=jnp.float32) + b1
    h1 = jnp.maximum(h1, 0.0)                       # activation_id -> ReLU
    h1 = _layernorm(h1, ln1_g, ln1_b)

    # ---- GRULayer (single layer), mask applied to incoming state ----
    h_prev = h_scr[...] * mask_ref[0]               # [B, H] * [B, 1]
    xcat = jnp.concatenate([h1, h_prev], axis=-1)   # [B, 2H]
    # fused MXU pass: [gi | gh] = xcat @ [[w_ih, 0], [0, w_hh]] + [b_ih | b_hh]
    gates = jnp.dot(xcat, wgru_ref[...], preferred_element_type=jnp.float32) + b_gru
    gi = gates[:, :3 * H]
    gh = gates[:, 3 * H:]
    rz = jax.nn.sigmoid(gi[:, :2 * H] + gh[:, :2 * H])   # one wide EUP slab
    r = rz[:, :H]
    z = rz[:, H:]
    n = jnp.tanh(gi[:, 2 * H:] + r * gh[:, 2 * H:])
    h_new = (1.0 - z) * n + z * h_prev

    # output LayerNorm inside GRULayer
    feat = _layernorm(h_new, ln2_g, ln2_b)

    # ---- value_out: Linear(H, 1) via VPU multiply + lane reduce (skip tiny MXU pass) ----
    val = jnp.sum(feat * w_out, axis=-1, keepdims=True) + b_out

    h_scr[...] = h_new
    val_ref[0] = val
    hout_ref[...] = h_new


def _pack_small_params(p):
    """Pack the 11 tiny row parameters into one [10, 6H] slab (one DMA)."""
    W = _SLAB_W
    f32 = jnp.float32

    def row(v, width):
        r = jnp.zeros((1, W), f32)
        return r.at[0, :width].set(v.reshape(-1))

    rows = [
        row(p["ln0_g"], OBS_DIM),       # 0
        row(p["ln0_b"], OBS_DIM),       # 1
        row(p["b1"], HIDDEN),           # 2
        row(p["ln1_g"], HIDDEN),        # 3
        row(p["ln1_b"], HIDDEN),        # 4
        row(p["ln2_g"], RNN_HIDDEN),    # 5
        row(p["ln2_b"], RNN_HIDDEN),    # 6
        row(p["w_out"], RNN_HIDDEN),    # 7  value-head weights as a row
        jnp.concatenate([p["b_ih"], p["b_hh"]], axis=-1),          # 8  [1, 6H]
        jnp.zeros((1, W), f32).at[0, 0].set(p["b_out"].reshape(())),  # 9  b_out
    ]
    return jnp.concatenate(rows, axis=0)


def _pack_gru_weights(p):
    """Block-diagonal [2H, 6H]: [[w_ih, 0], [0, w_hh]] so one MXU pass gives [gi | gh]."""
    H = RNN_HIDDEN
    Wg = jnp.zeros((HIDDEN + H, 6 * H), jnp.float32)
    Wg = Wg.at[:HIDDEN, :3 * H].set(p["w_ih"])
    Wg = Wg.at[HIDDEN:, 3 * H:].set(p["w_hh"])
    return Wg


def dsac_critic_forward(obs_seq, rnn_states, masks_seq, params):
    """obs_seq: [T, B, OBS_DIM], rnn_states: [B, 1, H], masks_seq: [T, B, 1].

    Returns (values [T, B, 1], new_rnn_states [B, 1, H]).  T=1 reproduces the
    module's single-step forward exactly.
    """
    T, B, _ = obs_seq.shape
    H = RNN_HIDDEN
    h0 = rnn_states[:, 0, :]                     # single recurrent layer

    w1 = params["w1"]
    wgru = _pack_gru_weights(params)
    pvec = _pack_small_params(params)

    in_specs = [
        pl.BlockSpec((1, B, OBS_DIM), lambda t: (t, 0, 0)),      # obs[t]
        pl.BlockSpec((1, B, 1), lambda t: (t, 0, 0)),            # mask[t]
        pl.BlockSpec((B, H), lambda t: (0, 0)),                  # h0 (resident)
        pl.BlockSpec((OBS_DIM, HIDDEN), lambda t: (0, 0)),       # w1 (resident)
        pl.BlockSpec((HIDDEN + H, 6 * H), lambda t: (0, 0)),     # fused GRU weights
        pl.BlockSpec((_SLAB_ROWS, _SLAB_W), lambda t: (0, 0)),   # packed small params
    ]
    out_specs = (
        pl.BlockSpec((1, B, 1), lambda t: (t, 0, 0)),            # values[t]
        pl.BlockSpec((B, H), lambda t: (0, 0)),                  # final hidden state
    )
    out_shape = (
        jax.ShapeDtypeStruct((T, B, 1), jnp.float32),
        jax.ShapeDtypeStruct((B, H), jnp.float32),
    )

    values, h_final = pl.pallas_call(
        dsac_critic_kernel,
        grid=(T,),
        in_specs=in_specs,
        out_specs=out_specs,
        out_shape=out_shape,
        scratch_shapes=[pltpu.VMEM((B, H), jnp.float32)],
        compiler_params=pltpu.CompilerParams(
            dimension_semantics=("arbitrary",)),   # sequential carry over time
    )(obs_seq, masks_seq, h0, w1, wgru, pvec)

    return values, h_final[:, None, :]             # restore [B, 1, H]


def init_params(key):
    ks = jax.random.split(key, 8)
    f32 = jnp.float32

    def u(k, shape, fan_in):
        lim = 1.0 / jnp.sqrt(fan_in)
        return jax.random.uniform(k, shape, f32, -lim, lim)

    H = RNN_HIDDEN
    return {
        # MLPBase
        "ln0_g": jnp.ones((1, OBS_DIM), f32),
        "ln0_b": jnp.zeros((1, OBS_DIM), f32),
        "w1": u(ks[0], (OBS_DIM, HIDDEN), OBS_DIM),
        "b1": u(ks[1], (1, HIDDEN), OBS_DIM),
        "ln1_g": jnp.ones((1, HIDDEN), f32),
        "ln1_b": jnp.zeros((1, HIDDEN), f32),
        # GRU (weights stored [in, 3H], gate order r|z|n like PyTorch)
        "w_ih": u(ks[2], (HIDDEN, 3 * H), H),
        "w_hh": u(ks[3], (H, 3 * H), H),
        "b_ih": u(ks[4], (1, 3 * H), H),
        "b_hh": u(ks[5], (1, 3 * H), H),
        "ln2_g": jnp.ones((1, H), f32),
        "ln2_b": jnp.zeros((1, H), f32),
        # value head
        "w_out": u(ks[6], (H, 1), H),
        "b_out": u(ks[7], (1, 1), H),
    }


def reference_forward(obs_seq, rnn_states, masks_seq, p):
    """Pure-JAX reference of the same rollout (uses the unpacked params)."""
    H = RNN_HIDDEN

    def step(h, inputs):
        obs, m = inputs
        x = _layernorm(obs, p["ln0_g"], p["ln0_b"])
        h1 = jnp.maximum(x @ p["w1"] + p["b1"], 0.0)
        h1 = _layernorm(h1, p["ln1_g"], p["ln1_b"])
        h_prev = h * m
        gi = h1 @ p["w_ih"] + p["b_ih"]
        gh = h_prev @ p["w_hh"] + p["b_hh"]
        r = jax.nn.sigmoid(gi[:, :H] + gh[:, :H])
        z = jax.nn.sigmoid(gi[:, H:2 * H] + gh[:, H:2 * H])
        n = jnp.tanh(gi[:, 2 * H:] + r * gh[:, 2 * H:])
        h_new = (1.0 - z) * n + z * h_prev
        feat = _layernorm(h_new, p["ln2_g"], p["ln2_b"])
        val = feat @ p["w_out"] + p["b_out"]
        return h_new, val

    h_final, vals = lax.scan(step, rnn_states[:, 0, :], (obs_seq, masks_seq))
    return vals, h_final[:, None, :]


if __name__ == "__main__":
    key = jax.random.PRNGKey(0)
    k_obs, k_h, k_m, k_p = jax.random.split(key, 4)

    obs_seq = jax.random.normal(k_obs, (SEQ_LEN, BATCH, OBS_DIM), jnp.float32)
    rnn_states = jax.random.normal(k_h, (BATCH, 1, RNN_HIDDEN), jnp.float32)
    masks_seq = (jax.random.uniform(k_m, (SEQ_LEN, BATCH, 1)) > 0.3).astype(jnp.float32)
    params = init_params(k_p)

    values, new_states = dsac_critic_forward(obs_seq, rnn_states, masks_seq, params)
    jax.block_until_ready((values, new_states))

    ref_values, ref_states = reference_forward(obs_seq, rnn_states, masks_seq, params)
    assert jnp.allclose(values, ref_values, atol=1e-4), "values mismatch"
    assert jnp.allclose(new_states, ref_states, atol=1e-4), "rnn state mismatch"

    print("KERNEL_OK")
</pallas_src>

<mosaic_0001>
module attributes {stable_mosaic.version = 11 : i64} {
  func.func @dsac_critic_kernel(%arg0: i32, %arg1: memref<1x8x16xf32, #tpu.memory_space<vmem>>, %arg2: memref<1x8x1xf32, #tpu.memory_space<vmem>>, %arg3: memref<8x32xf32, #tpu.memory_space<vmem>>, %arg4: memref<16x32xf32, #tpu.memory_space<vmem>>, %arg5: memref<64x192xf32, #tpu.memory_space<vmem>>, %arg6: memref<10x192xf32, #tpu.memory_space<vmem>>, %arg7: memref<1x8x1xf32, #tpu.memory_space<vmem>>, %arg8: memref<8x32xf32, #tpu.memory_space<vmem>>, %arg9: memref<8x32xf32, #tpu.memory_space<vmem>>) attributes {dimension_semantics = [#tpu.dimension_semantics<arbitrary>], iteration_bounds = array<i64: 8>, scalar_prefetch = 0 : i64, scratch_operands = 1 : i64, tpu.core_type = #tpu.core_type<tc>, window_params = [{transform_indices = @transform_0, window_bounds = array<i64: 1, 8, 16>}, {transform_indices = @transform_1, window_bounds = array<i64: 1, 8, 1>}, {pipeline_mode = #tpu.pipeline_mode<synchronous>, transform_indices = @transform_2, window_bounds = array<i64: 8, 32>}, {pipeline_mode = #tpu.pipeline_mode<synchronous>, transform_indices = @transform_3, window_bounds = array<i64: 16, 32>}, {pipeline_mode = #tpu.pipeline_mode<synchronous>, transform_indices = @transform_4, window_bounds = array<i64: 64, 192>}, {pipeline_mode = #tpu.pipeline_mode<synchronous>, transform_indices = @transform_5, window_bounds = array<i64: 10, 192>}, {transform_indices = @transform_6, window_bounds = array<i64: 1, 8, 1>}, {pipeline_mode = #tpu.pipeline_mode<synchronous>, transform_indices = @transform_7, window_bounds = array<i64: 8, 32>}]} {
    %c0_i32 = arith.constant 0 : i32
    %0 = arith.cmpi eq, %arg0, %c0_i32 : i32
    %1 = arith.extui %0 : i1 to i32
    %c0_i32_0 = arith.constant 0 : i32
    %2 = arith.cmpi ne, %1, %c0_i32_0 : i32
    scf.if %2 {
      %c0_50 = arith.constant 0 : index
      %c0_51 = arith.constant 0 : index
      %130 = vector.load %arg3[%c0_50, %c0_51] : memref<8x32xf32, #tpu.memory_space<vmem>>, vector<8x32xf32>
      %c0_52 = arith.constant 0 : index
      %c0_53 = arith.constant 0 : index
      %131 = vector.load %arg9[%c0_52, %c0_53] : memref<8x32xf32, #tpu.memory_space<vmem>>, vector<8x32xf32>
      tpu.vector_store %arg9[%c0_52, %c0_53], %130 {strides = array<i32>} : memref<8x32xf32, #tpu.memory_space<vmem>>, vector<8x32xf32>,
    } else {
    }
    %c0 = arith.constant 0 : index
    %c0_1 = arith.constant 0 : index
    %3 = vector.load %arg6[%c0, %c0_1] : memref<10x192xf32, #tpu.memory_space<vmem>>, vector<1x16xf32>
    %c1 = arith.constant 1 : index
    %c0_2 = arith.constant 0 : index
    %4 = vector.load %arg6[%c1, %c0_2] : memref<10x192xf32, #tpu.memory_space<vmem>>, vector<1x16xf32>
    %c2 = arith.constant 2 : index
    %c0_3 = arith.constant 0 : index
    %5 = vector.load %arg6[%c2, %c0_3] : memref<10x192xf32, #tpu.memory_space<vmem>>, vector<1x32xf32>
    %c3 = arith.constant 3 : index
    %c0_4 = arith.constant 0 : index
    %6 = vector.load %arg6[%c3, %c0_4] : memref<10x192xf32, #tpu.memory_space<vmem>>, vector<1x32xf32>
    %c4 = arith.constant 4 : index
    %c0_5 = arith.constant 0 : index
    %7 = vector.load %arg6[%c4, %c0_5] : memref<10x192xf32, #tpu.memory_space<vmem>>, vector<1x32xf32>
    %c5 = arith.constant 5 : index
    %c0_6 = arith.constant 0 : index
    %8 = vector.load %arg6[%c5, %c0_6] : memref<10x192xf32, #tpu.memory_space<vmem>>, vector<1x32xf32>
    %c6 = arith.constant 6 : index
    %c0_7 = arith.constant 0 : index
    %9 = vector.load %arg6[%c6, %c0_7] : memref<10x192xf32, #tpu.memory_space<vmem>>, vector<1x32xf32>
    %c7 = arith.constant 7 : index
    %c0_8 = arith.constant 0 : index
    %10 = vector.load %arg6[%c7, %c0_8] : memref<10x192xf32, #tpu.memory_space<vmem>>, vector<1x32xf32>
    %c8 = arith.constant 8 : index
    %c0_9 = arith.constant 0 : index
    %11 = vector.load %arg6[%c8, %c0_9] : memref<10x192xf32, #tpu.memory_space<vmem>>, vector<1x192xf32>
    %c9 = arith.constant 9 : index
    %c0_10 = arith.constant 0 : index
    %12 = vector.load %arg6[%c9, %c0_10] : memref<10x192xf32, #tpu.memory_space<vmem>>, vector<1x1xf32>
    %c0_11 = arith.constant 0 : index
    %c0_12 = arith.constant 0 : index
    %c0_13 = arith.constant 0 : index
    %13 = vector.load %arg1[%c0_11, %c0_12, %c0_13] : memref<1x8x16xf32, #tpu.memory_space<vmem>>, vector<1x8x16xf32>
    %14 = vector.shape_cast %13 : vector<1x8x16xf32> to vector<8x16xf32>
    %cst = arith.constant dense<0.000000e+00> : vector<8xf32>
    %15 = vector.multi_reduction <add>, %14, %cst [1] : vector<8x16xf32> to vector<8xf32>
    %16 = vector.shape_cast %15 : vector<8xf32> to vector<8x1xf32>
    %cst_14 = arith.constant 1.600000e+01 : f32
    %17 = vector.broadcast %cst_14 : f32 to vector<8x1xf32>
    %18 = arith.divf %16, %17 : vector<8x1xf32>
    %19 = vector.broadcast %18 : vector<8x1xf32> to vector<8x16xf32>
    %20 = arith.subf %14, %19 : vector<8x16xf32>
    %21 = arith.mulf %20, %20 : vector<8x16xf32>
    %cst_15 = arith.constant dense<0.000000e+00> : vector<8xf32>
    %22 = vector.multi_reduction <add>, %21, %cst_15 [1] : vector<8x16xf32> to vector<8xf32>
    %23 = vector.shape_cast %22 : vector<8xf32> to vector<8x1xf32>
    %cst_16 = arith.constant 1.600000e+01 : f32
    %24 = vector.broadcast %cst_16 : f32 to vector<8x1xf32>
    %25 = arith.divf %23, %24 : vector<8x1xf32>
    %26 = vector.broadcast %18 : vector<8x1xf32> to vector<8x16xf32>
    %27 = arith.subf %14, %26 : vector<8x16xf32>
    %cst_17 = arith.constant 9.99999974E-6 : f32
    %28 = vector.broadcast %cst_17 : f32 to vector<8x1xf32>
    %29 = arith.addf %25, %28 : vector<8x1xf32>
    %30 = math.rsqrt %29 : vector<8x1xf32>
    %31 = vector.broadcast %30 : vector<8x1xf32> to vector<8x16xf32>
    %32 = arith.mulf %27, %31 : vector<8x16xf32>
    %33 = vector.broadcast %3 : vector<1x16xf32> to vector<8x16xf32>
    %34 = arith.mulf %32, %33 : vector<8x16xf32>
    %35 = vector.broadcast %4 : vector<1x16xf32> to vector<8x16xf32>
    %36 = arith.addf %34, %35 : vector<8x16xf32>
    %c0_18 = arith.constant 0 : index
    %c0_19 = arith.constant 0 : index
    %37 = vector.load %arg4[%c0_18, %c0_19] : memref<16x32xf32, #tpu.memory_space<vmem>>, vector<16x32xf32>
    %cst_20 = arith.constant dense<0.000000e+00> : vector<8x32xf32>
    %38 = tpu.matmul %36, %37, %cst_20 {dimension_numbers = #tpu.dot_dimension_numbers<[1], [0], [0], [1], [0, 0, 1, 1], [], []>} : vector<8x16xf32>, vector<16x32xf32>, vector<8x32xf32> -> vector<8x32xf32>
    %39 = vector.broadcast %5 : vector<1x32xf32> to vector<8x32xf32>
    %40 = arith.addf %38, %39 : vector<8x32xf32>
    %cst_21 = arith.constant 0.000000e+00 : f32
    %41 = vector.broadcast %cst_21 : f32 to vector<8x32xf32>
    %42 = arith.maximumf %40, %41 : vector<8x32xf32>
    %cst_22 = arith.constant dense<0.000000e+00> : vector<8xf32>
    %43 = vector.multi_reduction <add>, %42, %cst_22 [1] : vector<8x32xf32> to vector<8xf32>
    %44 = vector.shape_cast %43 : vector<8xf32> to vector<8x1xf32>
    %cst_23 = arith.constant 3.200000e+01 : f32
    %45 = vector.broadcast %cst_23 : f32 to vector<8x1xf32>
    %46 = arith.divf %44, %45 : vector<8x1xf32>
    %47 = vector.broadcast %46 : vector<8x1xf32> to vector<8x32xf32>
    %48 = arith.subf %42, %47 : vector<8x32xf32>
    %49 = arith.mulf %48, %48 : vector<8x32xf32>
    %cst_24 = arith.constant dense<0.000000e+00> : vector<8xf32>
    %50 = vector.multi_reduction <add>, %49, %cst_24 [1] : vector<8x32xf32> to vector<8xf32>
    %51 = vector.shape_cast %50 : vector<8xf32> to vector<8x1xf32>
    %cst_25 = arith.constant 3.200000e+01 : f32
    %52 = vector.broadcast %cst_25 : f32 to vector<8x1xf32>
    %53 = arith.divf %51, %52 : vector<8x1xf32>
    %54 = vector.broadcast %46 : vector<8x1xf32> to vector<8x32xf32>
    %55 = arith.subf %42, %54 : vector<8x32xf32>
    %cst_26 = arith.constant 9.99999974E-6 : f32
    %56 = vector.broadcast %cst_26 : f32 to vector<8x1xf32>
    %57 = arith.addf %53, %56 : vector<8x1xf32>
    %58 = math.rsqrt %57 : vector<8x1xf32>
    %59 = vector.broadcast %58 : vector<8x1xf32> to vector<8x32xf32>
    %60 = arith.mulf %55, %59 : vector<8x32xf32>
    %61 = vector.broadcast %6 : vector<1x32xf32> to vector<8x32xf32>
    %62 = arith.mulf %60, %61 : vector<8x32xf32>
    %63 = vector.broadcast %7 : vector<1x32xf32> to vector<8x32xf32>
    %64 = arith.addf %62, %63 : vector<8x32xf32>
    %c0_27 = arith.constant 0 : index
    %c0_28 = arith.constant 0 : index
    %65 = vector.load %arg9[%c0_27, %c0_28] : memref<8x32xf32, #tpu.memory_space<vmem>>, vector<8x32xf32>
    %c0_29 = arith.constant 0 : index
    %c0_30 = arith.constant 0 : index
    %c0_31 = arith.constant 0 : index
    %66 = vector.load %arg2[%c0_29, %c0_30, %c0_31] : memref<1x8x1xf32, #tpu.memory_space<vmem>>, vector<1x8x1xf32>
    %67 = vector.shape_cast %66 : vector<1x8x1xf32> to vector<8x1xf32>
    %68 = vector.broadcast %67 : vector<8x1xf32> to vector<8x32xf32>
    %69 = arith.mulf %65, %68 : vector<8x32xf32>
    %70 = tpu.concatenate %64, %69 in 1 : vector<8x32xf32>, vector<8x32xf32> -> vector<8x64xf32>
    %c0_32 = arith.constant 0 : index
    %c0_33 = arith.constant 0 : index
    %71 = vector.load %arg5[%c0_32, %c0_33] : memref<64x192xf32, #tpu.memory_space<vmem>>, vector<64x192xf32>
    %cst_34 = arith.constant dense<0.000000e+00> : vector<8x192xf32>
    %72 = tpu.matmul %70, %71, %cst_34 {dimension_numbers = #tpu.dot_dimension_numbers<[1], [0], [0], [1], [0, 0, 1, 1], [], []>} : vector<8x64xf32>, vector<64x192xf32>, vector<8x192xf32> -> vector<8x192xf32>
    %73 = vector.broadcast %11 : vector<1x192xf32> to vector<8x192xf32>
    %74 = arith.addf %72, %73 : vector<8x192xf32>
    %75 = vector.extract_strided_slice %74 {offsets = [0, 0], sizes = [8, 96], strides = [1, 1]} : vector<8x192xf32> to vector<8x96xf32>
    %76 = vector.extract_strided_slice %74 {offsets = [0, 96], sizes = [8, 96], strides = [1, 1]} : vector<8x192xf32> to vector<8x96xf32>
    %77 = vector.extract_strided_slice %75 {offsets = [0, 0], sizes = [8, 64], strides = [1, 1]} : vector<8x96xf32> to vector<8x64xf32>
    %78 = vector.extract_strided_slice %76 {offsets = [0, 0], sizes = [8, 64], strides = [1, 1]} : vector<8x96xf32> to vector<8x64xf32>
    %79 = arith.addf %77, %78 : vector<8x64xf32>
    %80 = arith.negf %79 : vector<8x64xf32>
    %81 = math.exp %80 : vector<8x64xf32>
    %cst_35 = arith.constant 1.000000e+00 : f32
    %82 = vector.broadcast %cst_35 : f32 to vector<8x64xf32>
    %83 = arith.addf %82, %81 : vector<8x64xf32>
    %84 = arith.divf %82, %83 : vector<8x64xf32>
    %85 = vector.extract_strided_slice %84 {offsets = [0, 0], sizes = [8, 32], strides = [1, 1]} : vector<8x64xf32> to vector<8x32xf32>
    %86 = vector.extract_strided_slice %84 {offsets = [0, 32], sizes = [8, 32], strides = [1, 1]} : vector<8x64xf32> to vector<8x32xf32>
    %87 = vector.extract_strided_slice %75 {offsets = [0, 64], sizes = [8, 32], strides = [1, 1]} : vector<8x96xf32> to vector<8x32xf32>
    %88 = vector.extract_strided_slice %76 {offsets = [0, 64], sizes = [8, 32], strides = [1, 1]} : vector<8x96xf32> to vector<8x32xf32>
    %89 = arith.mulf %85, %88 : vector<8x32xf32>
    %90 = arith.addf %87, %89 : vector<8x32xf32>
    %91 = math.tanh %90 : vector<8x32xf32>
    %cst_36 = arith.constant 1.000000e+00 : f32
    %92 = vector.broadcast %cst_36 : f32 to vector<8x32xf32>
    %93 = arith.subf %92, %86 : vector<8x32xf32>
    %94 = arith.mulf %93, %91 : vector<8x32xf32>
    %95 = arith.mulf %86, %69 : vector<8x32xf32>
    %96 = arith.addf %94, %95 : vector<8x32xf32>
    %cst_37 = arith.constant dense<0.000000e+00> : vector<8xf32>
    %97 = vector.multi_reduction <add>, %96, %cst_37 [1] : vector<8x32xf32> to vector<8xf32>
    %98 = vector.shape_cast %97 : vector<8xf32> to vector<8x1xf32>
    %cst_38 = arith.constant 3.200000e+01 : f32
    %99 = vector.broadcast %cst_38 : f32 to vector<8x1xf32>
    %100 = arith.divf %98, %99 : vector<8x1xf32>
    %101 = vector.broadcast %100 : vector<8x1xf32> to vector<8x32xf32>
    %102 = arith.subf %96, %101 : vector<8x32xf32>
    %103 = arith.mulf %102, %102 : vector<8x32xf32>
    %cst_39 = arith.constant dense<0.000000e+00> : vector<8xf32>
    %104 = vector.multi_reduction <add>, %103, %cst_39 [1] : vector<8x32xf32> to vector<8xf32>
    %105 = vector.shape_cast %104 : vector<8xf32> to vector<8x1xf32>
    %cst_40 = arith.constant 3.200000e+01 : f32
    %106 = vector.broadcast %cst_40 : f32 to vector<8x1xf32>
    %107 = arith.divf %105, %106 : vector<8x1xf32>
    %108 = vector.broadcast %100 : vector<8x1xf32> to vector<8x32xf32>
    %109 = arith.subf %96, %108 : vector<8x32xf32>
    %cst_41 = arith.constant 9.99999974E-6 : f32
    %110 = vector.broadcast %cst_41 : f32 to vector<8x1xf32>
    %111 = arith.addf %107, %110 : vector<8x1xf32>
    %112 = math.rsqrt %111 : vector<8x1xf32>
    %113 = vector.broadcast %112 : vector<8x1xf32> to vector<8x32xf32>
    %114 = arith.mulf %109, %113 : vector<8x32xf32>
    %115 = vector.broadcast %8 : vector<1x32xf32> to vector<8x32xf32>
    %116 = arith.mulf %114, %115 : vector<8x32xf32>
    %117 = vector.broadcast %9 : vector<1x32xf32> to vector<8x32xf32>
    %118 = arith.addf %116, %117 : vector<8x32xf32>
    %119 = vector.broadcast %10 : vector<1x32xf32> to vector<8x32xf32>
    %120 = arith.mulf %118, %119 : vector<8x32xf32>
    %cst_42 = arith.constant dense<0.000000e+00> : vector<8xf32>
    %121 = vector.multi_reduction <add>, %120, %cst_42 [1] : vector<8x32xf32> to vector<8xf32>
    %122 = vector.shape_cast %121 : vector<8xf32> to vector<8x1xf32>
    %123 = vector.broadcast %12 : vector<1x1xf32> to vector<8x1xf32>
    %124 = arith.addf %122, %123 : vector<8x1xf32>
    %c0_43 = arith.constant 0 : index
    %c0_44 = arith.constant 0 : index
    %125 = vector.load %arg9[%c0_43, %c0_44] : memref<8x32xf32, #tpu.memory_space<vmem>>, vector<8x32xf32>
    tpu.vector_store %arg9[%c0_43, %c0_44], %96 {strides = array<i32>} : memref<8x32xf32, #tpu.memory_space<vmem>>, vector<8x32xf32>,
    %c0_45 = arith.constant 0 : index
    %c0_46 = arith.constant 0 : index
    %c0_47 = arith.constant 0 : index
    %126 = vector.load %arg7[%c0_45, %c0_46, %c0_47] : memref<1x8x1xf32, #tpu.memory_space<vmem>>, vector<1x8x1xf32>
    %127 = vector.shape_cast %126 : vector<1x8x1xf32> to vector<8x1xf32>
    %128 = vector.shape_cast %124 : vector<8x1xf32> to vector<1x8x1xf32>
    tpu.vector_store %arg7[%c0_45, %c0_46, %c0_47], %128 {strides = array<i32>} : memref<1x8x1xf32, #tpu.memory_space<vmem>>, vector<1x8x1xf32>,
    %c0_48 = arith.constant 0 : index
    %c0_49 = arith.constant 0 : index
    %129 = vector.load %arg8[%c0_48, %c0_49] : memref<8x32xf32, #tpu.memory_space<vmem>>, vector<8x32xf32>
    tpu.vector_store %arg8[%c0_48, %c0_49], %96 {strides = array<i32>} : memref<8x32xf32, #tpu.memory_space<vmem>>, vector<8x32xf32>,
    return
  }
  func.func @transform_0(%arg0: i32) -> (i32, i32, i32) {
    %c0_i32 = arith.constant 0 : i32
    %c0_i32_0 = arith.constant 0 : i32
    %c0_i32_1 = arith.constant 0 : i32
    return %arg0, %c0_i32, %c0_i32_0 : i32, i32, i32
  }
  func.func @transform_1(%arg0: i32) -> (i32, i32, i32) {
    %c0_i32 = arith.constant 0 : i32
    %c0_i32_0 = arith.constant 0 : i32
    %c0_i32_1 = arith.constant 0 : i32
    return %arg0, %c0_i32, %c0_i32_0 : i32, i32, i32
  }
  func.func @transform_2(%arg0: i32) -> (i32, i32) {
    %c0_i32 = arith.constant 0 : i32
    %c0_i32_0 = arith.constant 0 : i32
    %c0_i32_1 = arith.constant 0 : i32
    return %c0_i32, %c0_i32_0 : i32, i32
  }
  func.func @transform_3(%arg0: i32) -> (i32, i32) {
    %c0_i32 = arith.constant 0 : i32
    %c0_i32_0 = arith.constant 0 : i32
    %c0_i32_1 = arith.constant 0 : i32
    return %c0_i32, %c0_i32_0 : i32, i32
  }
  func.func @transform_4(%arg0: i32) -> (i32, i32) {
    %c0_i32 = arith.constant 0 : i32
    %c0_i32_0 = arith.constant 0 : i32
    %c0_i32_1 = arith.constant 0 : i32
    return %c0_i32, %c0_i32_0 : i32, i32
  }
  func.func @transform_5(%arg0: i32) -> (i32, i32) {
    %c0_i32 = arith.constant 0 : i32
    %c0_i32_0 = arith.constant 0 : i32
    %c0_i32_1 = arith.constant 0 : i32
    return %c0_i32, %c0_i32_0 : i32, i32
  }
  func.func @transform_6(%arg0: i32) -> (i32, i32, i32) {
    %c0_i32 = arith.constant 0 : i32
    %c0_i32_0 = arith.constant 0 : i32
    %c0_i32_1 = arith.constant 0 : i32
    return %arg0, %c0_i32, %c0_i32_0 : i32, i32, i32
  }
  func.func @transform_7(%arg0: i32) -> (i32, i32) {
    %c0_i32 = arith.constant 0 : i32
    %c0_i32_0 = arith.constant 0 : i32
    %c0_i32_1 = arith.constant 0 : i32
    return %c0_i32, %c0_i32_0 : i32, i32
  }
}

</mosaic_0001>

<bundles_post_ra>
// kernel: tpu_custom_call.1
= control target key start
LH: loop header
LB: loop body
LE: loop exit
PB: predicated region body
PF: predicated region fallthrough
CT: control target
= control target key end

     0   :  { %13 = vsyncpa [#allocation4], 0  ;;  %s1196_s0 = inlined_call_operand.vmem [shape: f32[8,8,16], index: 0, kind: input, shape index: {}]   ;;  %s1197_s1 = inlined_call_operand.vmem [shape: f32[8,8,1], index: 1, kind: input, shape index: {}]   ;;  %s1198_s2 = inlined_call_operand.vmem [shape: f32[8,32], index: 2, kind: input, shape index: {}]   ;;  %s1199_s3 = inlined_call_operand.hbm [shape: f32[16,32], index: 3, kind: input, shape index: {}]   ;;  %s1200_s4 = inlined_call_operand.hbm [shape: f32[64,192], index: 4, kind: input, shape index: {}]   ;;  %s1201_s5 = inlined_call_operand.hbm [shape: f32[10,192], index: 5, kind: input, shape index: {}]   ;;  %s1202_s6 = inlined_call_operand.vmem [shape: f32[8,8,1], index: 6, kind: output, shape index: {0}]   ;;  %s1203_s7 = inlined_call_operand.hbm [shape: f32[8,32], index: 7, kind: output, shape index: {1}]  }
   0x1   :  { %14 = vsyncpa [#allocation7], 0 }
   0x2   :  { %15 = vsyncpa [#allocation5], 0  ;;  %s1057_s24 = smov 0  }
   0x3 LB: > { %s1003_s25 = smov [#allocation6]   ;;  %s1063_s27 = sadd.s32 4294967295, %s1001_s24   ;;  %s1001_s24 = sphi %s1057_s24, %s21_s24  }
   0x4   : > { %s237_s26 = sshll.u32 %s1003_s25, 4  ;;  %p781_p0 = scmp.ge.s32.totalorder %s1001_s24, 1  ;;  %s238_s26 = int_to_ptr.vmem [resolvable:$true] %s237_s26 }
   0x5   : > { %p209_p1 = scmp.lt.s32.totalorder %s1001_s24, 9  ;;  %p782_p2 = scmp.ne.s32.totalorder %s1063_s27, 0 }
   0x6   : > { %p837_p3 = scmp.eq.s32.totalorder %s1063_s27, 0  ;;  %s1004_s29 = smov [#allocation3]  }
   0x7   : > { %p1069_p4 = pnand %p781_p0, %p209_p1  ;;  %s224_s30 = sshll.u32 %s1004_s29, 4  ;;  %s1075_s30 = int_to_ptr.vmem [resolvable:$true] %s224_s30 }
   0x8   : > { %s1005_s9 = smov [#allocation8]   ;;  %s892_s11 = scalar_lea.vmem %s238_s26, 2048 }
   0x9   : > { %p827_p5 = pneg %p1069_p4  ;;  %s1083_s10 = sshll.u32 %s1005_s9, 4  ;;  %s251_s10 = int_to_ptr.vmem [resolvable:$true] %s1083_s10 }
   0xa   : > { %p893_p8 = scmp.ne.s32.totalorder %s238_s26, %s892_s11  ;;  %p900_p11 = scmp.lt.s32.totalorder %s238_s26, %s238_s26 }
   0xb   : > { %p1079_p6 = pnand %p837_p3, %p827_p5  ;;  %p901_p12 = scmp.lt.s32.totalorder %s892_s11, %s892_s11 }
   0xd   : > { %p883_p7 = pneg %p1079_p6  ;;  %p902_p13 = por %p901_p12, %p900_p11 }
   0xf   : > { %p895_p9 = pnand %p893_p8, %p883_p7 }
  0x11   : > { %p896_p10 = pneg %p895_p9 }
  0x13   : > { %p903_p0 = pnand %p902_p13, %p896_p10 }
  0x15   : > { %906 = shalt.err (!%p903_p0)
}
  0x16   : > { %s1006_s12 = smov 256   ;;  %s1007_s13 = smov 16  }
  0x17   : > { %833 = dma.hbm_to_vmem [thread:$0]  (!%p1079_p6), %s1200_s4, 2048, %s238_s26, [#allocation7], %s1006_s12, %s1006_s12, %s1007_s13  }
  0x18   : > { %s918_s16 = scalar_lea.vmem %s1075_s30, 256  ;;  %p926_p9 = scmp.lt.s32.totalorder %s1075_s30, %s1075_s30 }
  0x19   : > { %p919_p1 = scmp.ne.s32.totalorder %s1075_s30, %s918_s16  ;;  %p927_p10 = scmp.lt.s32.totalorder %s918_s16, %s918_s16 }
  0x1b   : > { %p921_p5 = pnand %p919_p1, %p883_p7  ;;  %p928_p11 = por %p927_p10, %p926_p9 }
  0x1d   : > { %p922_p8 = pneg %p921_p5 }
  0x1f   : > { %p929_p12 = pnand %p928_p11, %p922_p8 }
  0x21   : > { %932 = shalt.err (!%p929_p12)
}
  0x22   : > { %s1008_s17 = smov 128   ;;  %s1009_s18 = smov 8  }
  0x23   : > { %830 = dma.hbm_to_vmem [thread:$0]  (!%p1079_p6), %s1199_s3, 256, %s1075_s30, [#allocation4], %s1008_s17, %s1008_s17, %s1009_s18  }
  0x24   : > { %s944_s21 = scalar_lea.vmem %s251_s10, 512  ;;  %p952_p5 = scmp.lt.s32.totalorder %s251_s10, %s251_s10 }
  0x25   : > { %p945_p13 = scmp.ne.s32.totalorder %s251_s10, %s944_s21  ;;  %p953_p8 = scmp.lt.s32.totalorder %s944_s21, %s944_s21 }
  0x27   : > { %p947_p0 = pnand %p945_p13, %p883_p7  ;;  %p954_p9 = por %p953_p8, %p952_p5 }
  0x29   : > { %p948_p1 = pneg %p947_p0 }
  0x2b   : > { %p955_p10 = pnand %p954_p9, %p948_p1 }
  0x2d   : > { %958 = shalt.err (!%p955_p10)
}
  0x2e   : > { %836 = dma.hbm_to_vmem [thread:$0]  (!%p1079_p6), %s1201_s5, 512, %s251_s10, [#allocation7], %s1006_s12, %s1006_s12, %s1007_s13  }
  0x2f   : > { %280 = sbr.rel (%p1069_p4) target bundleno = 2280 (0x8e8), region = 44 }
  0x34   : > { %988 = dma.done.wait (%p837_p3), [#allocation4], 256  }
  0x35   : > { %990 = vsyncadd (%p837_p3), [#allocation4], 4294967040 }
  0x36   : > { %992 = dma.done.wait (%p837_p3), [#allocation7], 2560  }
  0x37   : > { %994 = vsyncadd (%p837_p3), [#allocation7], 4294964736  ;;  %p322_p7 = scmp.lt.s32.totalorder %s1063_s27, 7 }
  0x39   : > { %s323_s25 = scalar_select %p322_p7, %s1063_s27, 7 }
  0x3a   : > { %337 = sbr.rel (%p782_p2) target bundleno = 65 (0x41), region = 60 }
  0x3b   : > { %s1129_s26 = sshll.u32 %s323_s25, 3 }
  0x3c   : > { %s325_s30 = scalar_lea.vmem %s1196_s0, %s1129_s26  ;;  %s329_s10 = scalar_lea.vmem %s1197_s1, %s1129_s26 }
  0x3d   : > { %s333_s13 = scalar_lea.vmem %s1202_s6, %s1129_s26 }
  0x3f   : > { %v338_v0 = vld [vmem:[%s1198_s2] sm:$0xff]  ;;  %vm339_vm0 = vcmask 261120  }
  0x40   : > { %340 = vst.msk [vmem:[#allocation2] sm:$0xff] %vm339_vm0, %v338_v0 }
  0x41 PF: > { %v352_v1 = vld [vmem:[%s325_s30] sm:$0xff]  ;;  %vm353_vm1 = vcmask 130048   ;;  %v371_v8 = vld [vmem:[#allocation3 + $0x8] sm:$0xff]  ;;  %v1010_v9 = vmov 0.0   ;;  %v370_v10 = vld [vmem:[#allocation3] sm:$0xff]  ;;  %vm1011_vm2 = vmmov 0   ;;  %v493_v63 = vlaneseq }
  0x42   : > { %v354_v2 = vsel %vm353_vm1, %v352_v1, 0.0  ;;  %804 = vmatprep.subr.mxu0 %v1010_v9  ;;  %808 = vmatprep.mubr.msk.f32.mxu0 %vm1011_vm2, %v1010_v9  ;;  %v341_v15 = vld [vmem:[#allocation8] ss:$0 sm:$0xff]  ;;  %v342_v17 = vld [vmem:[#allocation8 + $0x1] ss:$0 sm:$0xff]  ;;  %v1012_v20 = vmov 0  }
  0x43   : > { %355 = vadd.xlane.f32.xlu0 %v354_v2  ;;  %805 = vmatpush3.msra.mxu0 %v371_v8  ;;  %v343_v21 = vld [vmem:[#allocation8 + $0x2] ss:$0 sm:$0xff]  ;;  %vm446_vm3 = vcmask 261120   ;;  %v464_v27 = vld [vmem:[%s329_s10] sm:$0xff]  ;;  %v491_v33 = vld [vmem:[#allocation6 + $0x78] sm:$0xff]  ;;  %s1013_s18 = smov 32  }
  0x44   : > { %571 = vmatprep.mubr.f32.mxu1 %v1010_v9  ;;  %806 = vmatprep.subr.mxu0 %v1010_v9  ;;  %v490_v34 = vld [vmem:[#allocation6 + $0x70] sm:$0xff]  ;;  %v489_v35 = vld [vmem:[#allocation6 + $0x68] sm:$0xff]  ;;  %v488_v38 = vld [vmem:[#allocation6 + $0x60] sm:$0xff]  ;;  %vm503_vm4 = vcmask 523264   ;;  %v494_v0 = vshrl.u32 %v493_v63, 7  ;;  %s1014_s19 = smov 96  }
  0x45   : > { %807 = vmatpush3.msra.mxu0 %v370_v10  ;;  %867 = vset.pattern.permute.xlu1 %v1012_v20  ;;  %v487_v39 = vld [vmem:[#allocation6 + $0x58] sm:$0xff]  ;;  %v486_v40 = vld [vmem:[#allocation6 + $0x50] sm:$0xff]  ;;  %v485_v42 = vld [vmem:[#allocation6 + $0x48] sm:$0xff]  ;;  %s1015_s20 = smov 64   ;;  %p843_p2 = scmp.eq.s32.totalorder %s1063_s27, 7 }
  0x46   : > { %868 = vset.pattern.permute.xlu0 %v1012_v20  ;;  %523 = vmatprep.subr.mxu1 %v491_v33  ;;  %v484_v43 = vld [vmem:[#allocation6 + $0x40] sm:$0xff]  ;;  %v483_v44 = vld [vmem:[#allocation6 + $0x38] sm:$0xff]  ;;  %v482_v45 = vld [vmem:[#allocation6 + $0x30] sm:$0xff]  ;;  %s1016_s21 = smov [#allocation9]  }
  0x47   : > { %v463_v36 = vld [vmem:[#allocation2] sm:$0xff]  ;;  %524 = vmatpush1.msra.mxu1 %v490_v34  ;;  %v480_v47 = vld [vmem:[#allocation6 + $0x20] sm:$0xff]  ;;  %v479_v48 = vld [vmem:[#allocation6 + $0x18] sm:$0xff]  ;;  %s673_s22 = sshll.u32 %s1016_s21, 4  ;;  %s674_s22 = int_to_ptr.vmem [resolvable:$true] %s673_s22 }
  0x48   : > { %525 = vmatprep.subr.mxu1 %v489_v35  ;;  %v481_v46 = vld [vmem:[#allocation6 + $0x28] sm:$0xff]  ;;  %v478_v49 = vld [vmem:[#allocation6 + $0x10] sm:$0xff]  ;;  %v476_v51 = vld [vmem:[#allocation6] sm:$0xff]  ;;  %s959_s23 = scalar_lea.vmem %s674_s22, 128  ;;  %p966_p11 = scmp.lt.s32.totalorder %s674_s22, %s674_s22 }
  0x49   : > { %526 = vmatpush1.msra.mxu1 %v488_v38  ;;  %v477_v50 = vld [vmem:[#allocation6 + $0x8] sm:$0xff]  ;;  %v344_v56 = vld [vmem:[#allocation8 + $0x3] ss:$0 sm:$0xff]  ;;  %v345_v58 = vld [vmem:[#allocation8 + $0x4] ss:$0 sm:$0xff]  ;;  %p960_p3 = scmp.ne.s32.totalorder %s674_s22, %s959_s23  ;;  %p967_p12 = scmp.lt.s32.totalorder %s959_s23, %s959_s23 }
  0x4a   : > { %527 = vmatprep.subr.mxu1 %v487_v39  ;;  %v350_v2 = vld [vmem:[#allocation8 + $0x10] ss:$8 sm:$0x3]  ;;  %v348_v35 = vld [vmem:[#allocation8 + $0x7] ss:$0 sm:$0xff] }
  0x4b   : > { %528 = vmatpush1.msra.mxu1 %v486_v40  ;;  %v347_v38 = vld [vmem:[#allocation8 + $0x6] ss:$0 sm:$0xff]  ;;  %p961_p4 = pnand %p960_p3, %p843_p2  ;;  %p968_p13 = por %p967_p12, %p966_p11 }
  0x4c   : > { %529 = vmatprep.subr.mxu1 %v485_v42 }
  0x4d   : > { %530 = vmatpush1.msra.mxu1 %v484_v43  ;;  %p962_p6 = pneg %p961_p4 }
  0x4e   : > { %531 = vmatprep.subr.mxu1 %v483_v44 }
  0x4f   : > { %532 = vmatpush1.msra.mxu1 %v482_v45  ;;  %p969_p0 = pnand %p968_p13, %p962_p6 }
  0x50   : > { %533 = vmatprep.subr.mxu1 %v481_v46 }
  0x51   : > { %534 = vmatpush1.msra.mxu1 %v480_v47 }
  0x52   : > { %535 = vmatprep.subr.mxu1 %v479_v48 }
  0x53   : > { %536 = vmatpush1.msra.mxu1 %v478_v49 }
  0x54   : > { %537 = vmatprep.subr.mxu1 %v477_v50 }
  0x55   : > { %538 = vmatpush1.msra.mxu1 %v476_v51 }
  0xcc   : > { %v356_v3 = vpop.xlane.xlu0 %355 }
  0xcd   : > { %v358_v4 = vmul.f32 0.0625, %v356_v3 }
  0xcf   : > { %v359_v5 = vsub.f32 %v352_v1, %v358_v4  ;;  %v495_v1 = vsub.s32 0, %v494_v0  ;;  %v499_v4 = vsub.s32 1, %v494_v0 }
  0xd1   : > { %v360_v6 = vmul.f32 %v359_v5, %v359_v5  ;;  %v496_v3 = vrot.slane %v350_v2, %v495_v1 }
  0xd3   : > { %v361_v7 = vsel %vm353_vm1, %v360_v6, 0.0 }
  0xd4   : > { %362 = vadd.xlane.f32.xlu0 %v361_v7  ;;  %v500_v7 = vrot.slane %v350_v2, %v499_v4 }
 0x15d   : > { %v363_v11 = vpop.xlane.xlu0 %362 }
 0x15e   : > { %v364_v12 = vmul.f32 0.0625, %v363_v11 }
 0x160   : > { %v365_v13 = vadd.f32 1e-05, %v364_v12 }
 0x162   : > { %869 = vrsqrt.f32 %v365_v13 }
 0x16f   : > { %v870_v14 = vpop.eup %869 }
 0x170   : > { %v367_v16 = vmul.f32 %v870_v14, %v359_v5 }
 0x172   : > { %v368_v18 = vmul.f32 %v367_v16, %v341_v15 }
 0x174   : > { %v369_v19 = vadd.f32 %v368_v18, %v342_v17 }
 0x176   : > { %809 = vmatmul.mubr.msk.f32.vlgmr.msra.gmra.mxu0 %vm353_vm1, %v369_v19 }
 0x236   : > { %v441_v22 = vpop.f32.mrf.mxu0 }
 0x237   : > { %v442_v23 = vadd.f32 %v441_v22, %v343_v21 }
 0x238   : > { %v810_v24 = vpop.f32.mrf.mxu0 }
 0x239   : > { %v445_v25 = vmax.f32 %v442_v23, 0.0 }
 0x23b   : > { %v447_v26 = vsel %vm446_vm3, %v445_v25, 0.0 }
 0x23c   : > { %448 = vadd.xlane.f32.xlu1 %v447_v26 }
 0x24d   : > { %467 = vperm.xlu1 %867, %v464_v27  }
 0x2c5   : > { %v449_v28 = vpop.xlane.xlu1 %448 }
 0x2c6   : > { %v451_v29 = vmul.f32 0.03125, %v449_v28 }
 0x2c8   : > { %v452_v30 = vsub.f32 %v445_v25, %v451_v29 }
 0x2c9   : > { %v468_v37 = vpop.permute.xlu1 %467 }
 0x2ca   : > { %v453_v31 = vmul.f32 %v452_v30, %v452_v30  ;;  %v470_v41 = vmul.f32 %v468_v37, %v463_v36 }
 0x2cc   : > { %v454_v32 = vsel %vm446_vm3, %v453_v31, 0.0 }
 0x2cd   : > { %455 = vadd.xlane.f32.xlu0 %v454_v32 }
 0x2e3   : > { %472 = vrot.lane.b32.xlu0 %v470_v41, %s1013_s18 }
 0x356   : > { %v456_v52 = vpop.xlane.xlu0 %455 }
 0x357   : > { %v457_v53 = vmul.f32 0.03125, %v456_v52 }
 0x359   : > { %v458_v54 = vadd.f32 1e-05, %v457_v53 }
 0x35a   : > { %v473_v60 = vpop.permute.xlu0 %472 }
 0x35b   : > { %871 = vrsqrt.f32 %v458_v54 }
 0x368   : > { %v872_v55 = vpop.eup %871 }
 0x369   : > { %v460_v57 = vmul.f32 %v872_v55, %v452_v30  ;;  %v346_v30 = vld [vmem:[#allocation8 + $0x5] ss:$0 sm:$0xff] }
 0x36b   : > { %v461_v59 = vmul.f32 %v460_v57, %v344_v56 }
 0x36d   : > { %v462_v61 = vadd.f32 %v461_v59, %v345_v58 }
 0x36f   : > { %v475_v62 = vsel %vm446_vm3, %v462_v61, %v473_v60 }
 0x370   : > { %795 = vmatmul.mubr.msk.f32.vlgmr.msra.gmra.mxu1 %vm503_vm4, %v475_v62 }
 0x430   : > { %v573_v5 = vpop.f32.mrf.mxu1 }
 0x431   : > { %v574_v6 = vadd.f32 %v573_v5, %v496_v3 }
 0x432   : > { %v575_v8 = vpop.f32.mrf.mxu1 }
 0x433   : > { %580 = vrot.lane.b32.xlu1 %v574_v6, %s1013_s18  ;;  %v576_v9 = vadd.f32 %v575_v8, %v500_v7 }
 0x437   : > { %582 = vrot.lane.b32.xlu1 %v576_v9, %s1013_s18 }
 0x43b   : > { %593 = vrot.lane.b32.xlu1 %v576_v9, %s1014_s19 }
 0x4a5   : > { %v581_v10 = vpop.permute.xlu1 %580 }
 0x4a9   : > { %v583_v11 = vpop.permute.xlu1 %582 }
 0x4aa   : > { %v584_v12 = vsel %vm446_vm3, %v581_v10, %v583_v11 }
 0x4ab   : > { %v586_v13 = vadd.f32 %v584_v12, %v574_v6 }
 0x4ad   : > { %v796_v14 = vmul.f32 -1.442695, %v586_v13  ;;  %v594_v18 = vpop.permute.xlu1 %593 }
 0x4af   : > { %873 = vpow2.f32 %v796_v14 }
 0x4bc   : > { %v874_v15 = vpop.eup %873 }
 0x4bd   : > { %v590_v16 = vadd.f32 1.0, %v874_v15 }
 0x4bf   : > { %875 = vrcp.f32 %v590_v16 }
 0x4cc   : > { %v876_v17 = vpop.eup %875 }
 0x4cd   : > { %v596_v19 = vmul.f32 %v876_v17, %v594_v18  ;;  %v603_v23 = vsub.f32 1.0, %v876_v17  ;;  %v609_v25 = vmul.f32 %v876_v17, %v473_v60 }
 0x4cf   : > { %598 = vrot.lane.b32.xlu1 %v596_v19, %s1015_s20 }
 0x541   : > { %v599_v20 = vpop.permute.xlu1 %598 }
 0x542   : > { %v601_v21 = vadd.f32 %v599_v20, %v574_v6 }
 0x544   : > { %877 = vtanh.f32 %v601_v21 }
 0x551   : > { %v878_v22 = vpop.eup %877 }
 0x552   : > { %605 = vrot.lane.b32.xlu0 %v878_v22, %s1014_s19 }
 0x5c4   : > { %v606_v24 = vpop.permute.xlu0 %605 }
 0x5c5   : > { %v608_v26 = vmul.f32 %v606_v24, %v603_v23 }
 0x5c7   : > { %v610_v27 = vadd.f32 %v609_v25, %v608_v26 }
 0x5c9   : > { %612 = vrot.lane.b32.xlu1 %v610_v27, %s1014_s19 }
 0x63b   : > { %v613_v28 = vpop.permute.xlu1 %612 }
 0x63c   : > { %655 = vst.msk [vmem:[#allocation2] sm:$0xff] %vm446_vm3, %v613_v28  ;;  %658 = vst.msk [vmem:[#allocation9] sm:$0xff] %vm446_vm3, %v613_v28  ;;  %v615_v29 = vsel %vm446_vm3, %v613_v28, 0.0 }
 0x63d   : > { %616 = vadd.xlane.f32.xlu0 %v615_v29 }
 0x653   : > { %633 = vrot.lane.b32.xlu0 %v346_v30, %s1013_s18 }
 0x657   : > { %643 = vrot.lane.b32.xlu0 %v348_v35, %s1013_s18 }
 0x6c6   : > { %v617_v31 = vpop.xlane.xlu0 %616 }
 0x6c7   : > { %v618_v32 = vmul.f32 0.03125, %v617_v31 }
 0x6c9   : > { %v619_v33 = vsub.f32 %v610_v27, %v618_v32 }
 0x6ca   : > { %v634_v42 = vpop.permute.xlu0 %633 }
 0x6cb   : > { %v620_v34 = vmul.f32 %v619_v33, %v619_v33 }
 0x6cd   : > { %622 = vrot.lane.b32.xlu1 %v620_v34, %s1014_s19 }
 0x6ce   : > { %v644_v47 = vpop.permute.xlu0 %643 }
 0x73f   : > { %v623_v36 = vpop.permute.xlu1 %622 }
 0x740   : > { %v625_v37 = vsel %vm446_vm3, %v623_v36, 0.0 }
 0x741   : > { %626 = vadd.xlane.f32.xlu1 %v625_v37 }
 0x752   : > { %638 = vrot.lane.b32.xlu1 %v347_v38, %s1013_s18 }
 0x7ca   : > { %v627_v39 = vpop.xlane.xlu1 %626 }
 0x7cb   : > { %v628_v40 = vmul.f32 0.03125, %v627_v39 }
 0x7cd   : > { %v629_v41 = vadd.f32 1e-05, %v628_v40 }
 0x7ce   : > { %v639_v45 = vpop.permute.xlu1 %638 }
 0x7cf   : > { %879 = vrsqrt.f32 %v629_v41 }
 0x7dc   : > { %v880_v43 = vpop.eup %879 }
 0x7dd   : > { %v631_v44 = vmul.f32 %v880_v43, %v619_v33 }
 0x7df   : > { %v636_v46 = vmul.f32 %v634_v42, %v631_v44 }
 0x7e1   : > { %v641_v48 = vadd.f32 %v639_v45, %v636_v46 }
 0x7e3   : > { %v646_v49 = vmul.f32 %v644_v47, %v641_v48 }
 0x7e5   : > { %648 = vrot.lane.b32.xlu0 %v646_v49, %s1014_s19 }
 0x857   : > { %v649_v50 = vpop.permute.xlu0 %648 }
 0x858   : > { %v651_v51 = vsel %vm446_vm3, %v649_v50, 0.0 }
 0x859   : > { %652 = vadd.xlane.f32.xlu1 %v651_v51 }
 0x85a   : > { %972 = shalt.err (!%p969_p0)
}
 0x85b   : > { %824 = dma.vmem_to_hbm [thread:$0]  (%p843_p2), %s674_s22, 128, %s1203_s7, [#allocation5]   ;;  %v351_v52 = vld [vmem:[#allocation8 + $0x11] ss:$0 sm:$0xff]  ;;  %vm656_vm5 = vcmask 7168  }
 0x8e2   : > { %v653_v53 = vpop.xlane.xlu1 %652 }
 0x8e3   : > { %v654_v54 = vadd.f32 %v653_v53, %v351_v52 }
 0x8e5   : > { %657 = vst.msk [vmem:[%s333_s13] sm:$0xff] %vm656_vm5, %v654_v54 }
 0x8e6   : > { %996 = dma.done.wait (%p843_p2), [#allocation5], 128  }
 0x8e7   : > { %998 = vsyncadd (%p843_p2), [#allocation5], 4294967168 }
 0x8e8 PF: > { %s21_s24 = sadd.s32 1, %s1001_s24  }
 0x8e9   : > { %p18_p1 = scmp.ge.s32.totalorder %s21_s24, 10  }
 0x8eb   :  { %20 = sbr.rel (!%p18_p1) target bundleno = 3 (0x3), region = 104 }
 0x8f0   :  { %693 = vsyncpa [#allocation4], 1 }
 0x8f1   :  { %695 = vsyncpa [#allocation4 + $0x1], 1 }
 0x8f2   :  { %696 = vsyncpa [#allocation7], 1 }
 0x8f3   :  { %697 = vsyncpa [#allocation5], 1 }
 0x8f4   :  { %699 = vsyncpa [#allocation5 + $0x1], 1 }

</bundles_post_ra>
